<compile_context>
chip_gen: v7x
topology: tpu7x:2x2x1
jax: 0.10.0
libtpu: 0.0.40
codegen_flags: <defaults>
</compile_context>

<pallas_src>
import jax
import jax.numpy as jnp
from jax.experimental import pallas as pl
from jax.experimental.pallas import tpu as pltpu

LANE = 128  # TPU lane width; output padded to a multiple of this for unmasked stores.


def mlp_kernel(x_ref, w1_ref, b1_ref, w2_ref, b2_ref, o_ref):
    # Dropout (eval) == identity; BN affines are pre-folded into w1/b1 and w2/b2.
    x = x_ref[...]                                                        # (BN, F_in) f32

    # Linear #1 (BN1 folded) + ReLU.
    h = jnp.dot(x, w1_ref[...], preferred_element_type=jnp.float32) + b1_ref[...]
    h = jnp.maximum(h, 0.0)                                               # (BN, hid)

    # Linear #2 (BN2 folded), output padded to a lane-dense width.
    o = jnp.dot(h, w2_ref[...], preferred_element_type=jnp.float32) + b2_ref[...]
    o_ref[...] = o.astype(o_ref.dtype)                                    # (BN, F_out_pad)


def fold_params(params):
    """Fold eval-mode BatchNorm affines into the Linear weights; pad output to LANE."""
    # BN1 precedes Linear1:  relu((x*s1 + t1) @ w1 + b1) == relu(x @ (s1.T*w1) + (b1 + t1@w1))
    w1 = params["bn1_scale"].T * params["w1"]                 # (F_in, hid)
    b1 = params["b1"] + params["bn1_shift"] @ params["w1"]    # (1, hid)
    # BN2 precedes Linear2 (applied post-ReLU):  (h*s2 + t2) @ w2 + b2
    w2 = params["bn2_scale"].T * params["w2"]                 # (hid, F_out)
    b2 = params["b2"] + params["bn2_shift"] @ params["w2"]    # (1, F_out)

    out_features = w2.shape[1]
    f_out_pad = pl.cdiv(out_features, LANE) * LANE
    if f_out_pad != out_features:
        w2 = jnp.pad(w2, ((0, 0), (0, f_out_pad - out_features)))
        b2 = jnp.pad(b2, ((0, 0), (0, f_out_pad - out_features)))
    return w1, b1, w2, b2, out_features


def mlp_forward(x, params, *, block_rows=1024):
    """x: (N, F_in) float32. params: dict of BN + linear parameters (unfolded)."""
    N, f_in = x.shape
    w1, b1, w2, b2, out_features = fold_params(params)
    hid = w1.shape[1]
    f_out_pad = w2.shape[1]

    # Batch tile: multiple of 8 sublanes, capped by block_rows; pad N up to a multiple.
    bn_rows = min(block_rows, pl.cdiv(N, 8) * 8)
    n_pad = pl.cdiv(N, bn_rows) * bn_rows
    if n_pad != N:
        x = jnp.pad(x, ((0, n_pad - N), (0, 0)))

    grid = (n_pad // bn_rows,)

    flops = 2 * n_pad * (f_in * hid + hid * f_out_pad)
    bytes_accessed = 4 * (n_pad * (f_in + f_out_pad)
                          + w1.size + b1.size + w2.size + b2.size)
    cost = pl.CostEstimate(flops=flops, transcendentals=0,
                           bytes_accessed=bytes_accessed)

    const = lambda i: (0, 0)  # weights/biases stay resident across grid steps

    out_pad = pl.pallas_call(
        mlp_kernel,
        out_shape=jax.ShapeDtypeStruct((n_pad, f_out_pad), jnp.float32),
        grid=grid,
        in_specs=[
            pl.BlockSpec((bn_rows, f_in), lambda i: (i, 0)),   # x: tiled over batch
            pl.BlockSpec((f_in, hid), const),                  # w1'
            pl.BlockSpec((1, hid), const),                     # b1'
            pl.BlockSpec((hid, f_out_pad), const),             # w2' (lane-padded)
            pl.BlockSpec((1, f_out_pad), const),               # b2' (lane-padded)
        ],
        out_specs=pl.BlockSpec((bn_rows, f_out_pad), lambda i: (i, 0)),
        compiler_params=pltpu.CompilerParams(
            dimension_semantics=("parallel",),                 # megacore on v7x
            vmem_limit_bytes=64 * 1024 * 1024,
        ),
        cost_estimate=cost,
    )(x, w1, b1, w2, b2)

    # Strip batch padding and the lane padding of the output head.
    return out_pad[:N, :out_features]


def init_params(key, in_features, hid, out_features, eps=1e-5):
    """Deterministic synthetic parameter init (matches PyTorch shapes)."""
    ks = jax.random.split(key, 12)

    def linear_init(kw, kb, fan_in, fan_out):
        # PyTorch nn.Linear default: U(-1/sqrt(fan_in), 1/sqrt(fan_in))
        bound = 1.0 / (fan_in ** 0.5)
        w = jax.random.uniform(kw, (fan_in, fan_out), jnp.float32, -bound, bound)
        b = jax.random.uniform(kb, (1, fan_out), jnp.float32, -bound, bound)
        return w, b

    def bn_fold(kg, kb, km, kv, feat):
        gamma = 1.0 + 0.1 * jax.random.normal(kg, (1, feat), jnp.float32)
        beta = 0.1 * jax.random.normal(kb, (1, feat), jnp.float32)
        mean = 0.1 * jax.random.normal(km, (1, feat), jnp.float32)
        var = jnp.abs(1.0 + 0.1 * jax.random.normal(kv, (1, feat), jnp.float32))
        scale = gamma / jnp.sqrt(var + eps)
        shift = beta - mean * scale
        return scale, shift

    bn1_scale, bn1_shift = bn_fold(ks[0], ks[1], ks[2], ks[3], in_features)
    w1, b1 = linear_init(ks[4], ks[5], in_features, hid)
    bn2_scale, bn2_shift = bn_fold(ks[6], ks[7], ks[8], ks[9], hid)
    w2, b2 = linear_init(ks[10], ks[11], hid, out_features)

    return dict(bn1_scale=bn1_scale, bn1_shift=bn1_shift, w1=w1, b1=b1,
                bn2_scale=bn2_scale, bn2_shift=bn2_shift, w2=w2, b2=b2)


def mlp_reference(x, p):
    """Pure-JAX reference of the same eval-mode forward (BN applied explicitly)."""
    h = x * p["bn1_scale"] + p["bn1_shift"]
    h = jnp.maximum(h @ p["w1"] + p["b1"], 0.0)
    h = h * p["bn2_scale"] + p["bn2_shift"]
    return h @ p["w2"] + p["b2"]


if __name__ == "__main__":
    # Small shapes consistent with the module defaults: hids=[16].
    in_features, hid, out_features = 32, 16, 8
    key = jax.random.PRNGKey(0)
    kx, kp, kx2 = jax.random.split(key, 3)
    params = init_params(kp, in_features, hid, out_features)

    # Test 1: tiny batch (single grid step).
    N = 8
    x = jax.random.normal(kx, (N, in_features), jnp.float32)
    out = jax.block_until_ready(mlp_forward(x, params))
    ref = mlp_reference(x, params)
    assert out.shape == (N, out_features)
    assert jnp.allclose(out, ref, atol=1e-4, rtol=1e-4), "mismatch vs reference (N=8)"

    # Test 2: non-multiple batch with a small block size -> exercises grid + padding.
    N2 = 200
    x2 = jax.random.normal(kx2, (N2, in_features), jnp.float32)
    out2 = jax.block_until_ready(mlp_forward(x2, params, block_rows=64))
    ref2 = mlp_reference(x2, params)
    assert out2.shape == (N2, out_features)
    assert jnp.allclose(out2, ref2, atol=1e-4, rtol=1e-4), "mismatch vs reference (N=200)"

    # TODO(synk): training-mode Dropout/BatchNorm (batch statistics + RNG masks) not
    # implemented; this kernel reproduces eval-mode forward semantics only.
    print("KERNEL_OK")
</pallas_src>

<mosaic_0001>
module attributes {stable_mosaic.version = 11 : i64} {
  func.func @mlp_kernel(%arg0: i32, %arg1: memref<8x32xf32, #tpu.memory_space<vmem>>, %arg2: memref<32x16xf32, #tpu.memory_space<vmem>>, %arg3: memref<1x16xf32, #tpu.memory_space<vmem>>, %arg4: memref<16x128xf32, #tpu.memory_space<vmem>>, %arg5: memref<1x128xf32, #tpu.memory_space<vmem>>, %arg6: memref<8x128xf32, #tpu.memory_space<vmem>>) attributes {dimension_semantics = [#tpu.dimension_semantics<parallel>], iteration_bounds = array<i64: 1>, scalar_prefetch = 0 : i64, scratch_operands = 0 : i64, tpu.core_type = #tpu.core_type<tc>, window_params = [{transform_indices = @transform_0, window_bounds = array<i64: 8, 32>}, {pipeline_mode = #tpu.pipeline_mode<synchronous>, transform_indices = @transform_1, window_bounds = array<i64: 32, 16>}, {pipeline_mode = #tpu.pipeline_mode<synchronous>, transform_indices = @transform_2, window_bounds = array<i64: 1, 16>}, {pipeline_mode = #tpu.pipeline_mode<synchronous>, transform_indices = @transform_3, window_bounds = array<i64: 16, 128>}, {pipeline_mode = #tpu.pipeline_mode<synchronous>, transform_indices = @transform_4, window_bounds = array<i64: 1, 128>}, {transform_indices = @transform_5, window_bounds = array<i64: 8, 128>}]} {
    %c0 = arith.constant 0 : index
    %c0_0 = arith.constant 0 : index
    %0 = vector.load %arg1[%c0, %c0_0] : memref<8x32xf32, #tpu.memory_space<vmem>>, vector<8x32xf32>
    %c0_1 = arith.constant 0 : index
    %c0_2 = arith.constant 0 : index
    %1 = vector.load %arg2[%c0_1, %c0_2] : memref<32x16xf32, #tpu.memory_space<vmem>>, vector<32x16xf32>
    %cst = arith.constant dense<0.000000e+00> : vector<8x16xf32>
    %2 = tpu.matmul %0, %1, %cst {dimension_numbers = #tpu.dot_dimension_numbers<[1], [0], [0], [1], [0, 0, 1, 1], [], []>} : vector<8x32xf32>, vector<32x16xf32>, vector<8x16xf32> -> vector<8x16xf32>
    %c0_3 = arith.constant 0 : index
    %c0_4 = arith.constant 0 : index
    %3 = vector.load %arg3[%c0_3, %c0_4] : memref<1x16xf32, #tpu.memory_space<vmem>>, vector<1x16xf32>
    %4 = vector.broadcast %3 : vector<1x16xf32> to vector<8x16xf32>
    %5 = arith.addf %2, %4 : vector<8x16xf32>
    %cst_5 = arith.constant 0.000000e+00 : f32
    %6 = vector.broadcast %cst_5 : f32 to vector<8x16xf32>
    %7 = arith.maximumf %5, %6 : vector<8x16xf32>
    %c0_6 = arith.constant 0 : index
    %c0_7 = arith.constant 0 : index
    %8 = vector.load %arg4[%c0_6, %c0_7] : memref<16x128xf32, #tpu.memory_space<vmem>>, vector<16x128xf32>
    %cst_8 = arith.constant dense<0.000000e+00> : vector<8x128xf32>
    %9 = tpu.matmul %7, %8, %cst_8 {dimension_numbers = #tpu.dot_dimension_numbers<[1], [0], [0], [1], [0, 0, 1, 1], [], []>} : vector<8x16xf32>, vector<16x128xf32>, vector<8x128xf32> -> vector<8x128xf32>
    %c0_9 = arith.constant 0 : index
    %c0_10 = arith.constant 0 : index
    %10 = vector.load %arg5[%c0_9, %c0_10] : memref<1x128xf32, #tpu.memory_space<vmem>>, vector<1x128xf32>
    %11 = vector.broadcast %10 : vector<1x128xf32> to vector<8x128xf32>
    %12 = arith.addf %9, %11 : vector<8x128xf32>
    %c0_11 = arith.constant 0 : index
    %c0_12 = arith.constant 0 : index
    %13 = vector.load %arg6[%c0_11, %c0_12] : memref<8x128xf32, #tpu.memory_space<vmem>>, vector<8x128xf32>
    tpu.vector_store %arg6[%c0_11, %c0_12], %12 {strides = array<i32>} : memref<8x128xf32, #tpu.memory_space<vmem>>, vector<8x128xf32>,
    return
  }
  func.func @transform_0(%arg0: i32) -> (i32, i32) {
    %c0_i32 = arith.constant 0 : i32
    %c0_i32_0 = arith.constant 0 : i32
    return %arg0, %c0_i32 : i32, i32
  }
  func.func @transform_1(%arg0: i32) -> (i32, i32) {
    %c0_i32 = arith.constant 0 : i32
    %c0_i32_0 = arith.constant 0 : i32
    %c0_i32_1 = arith.constant 0 : i32
    return %c0_i32, %c0_i32_0 : i32, i32
  }
  func.func @transform_2(%arg0: i32) -> (i32, i32) {
    %c0_i32 = arith.constant 0 : i32
    %c0_i32_0 = arith.constant 0 : i32
    %c0_i32_1 = arith.constant 0 : i32
    return %c0_i32, %c0_i32_0 : i32, i32
  }
  func.func @transform_3(%arg0: i32) -> (i32, i32) {
    %c0_i32 = arith.constant 0 : i32
    %c0_i32_0 = arith.constant 0 : i32
    %c0_i32_1 = arith.constant 0 : i32
    return %c0_i32, %c0_i32_0 : i32, i32
  }
  func.func @transform_4(%arg0: i32) -> (i32, i32) {
    %c0_i32 = arith.constant 0 : i32
    %c0_i32_0 = arith.constant 0 : i32
    %c0_i32_1 = arith.constant 0 : i32
    return %c0_i32, %c0_i32_0 : i32, i32
  }
  func.func @transform_5(%arg0: i32) -> (i32, i32) {
    %c0_i32 = arith.constant 0 : i32
    %c0_i32_0 = arith.constant 0 : i32
    return %arg0, %c0_i32 : i32, i32
  }
}

</mosaic_0001>

<bundles_post_ra>
// kernel: tpu_custom_call.1
= control target key start
LH: loop header
LB: loop body
LE: loop exit
PB: predicated region body
PF: predicated region fallthrough
CT: control target
= control target key end

     0   :  { %10 = vsyncpa [#allocation3], 0  ;;  %s574_s0 = inlined_call_operand.hbm [shape: f32[8,32], index: 0, kind: input, shape index: {}]   ;;  %s575_s1 = inlined_call_operand.hbm [shape: f32[32,16], index: 1, kind: input, shape index: {}]   ;;  %s576_s2 = inlined_call_operand.hbm [shape: f32[1,16], index: 2, kind: input, shape index: {}]   ;;  %s577_s3 = inlined_call_operand.hbm [shape: f32[16,128], index: 3, kind: input, shape index: {}]   ;;  %s578_s4 = inlined_call_operand.hbm [shape: f32[1,128], index: 4, kind: input, shape index: {}]   ;;  %s579_s5 = inlined_call_operand.hbm [shape: f32[8,128], index: 5, kind: output, shape index: {}]  }
   0x1   :  { %11 = vsyncpa [#allocation6], 0 }
   0x2   :  { %12 = vsyncpa [#allocation9], 0 }
   0x3   :  { %13 = vsyncpa [#allocation4], 0  ;;  %s461_s18 = smov [#allocation5]   ;;  %s321_s22 = scalar_lea.hbm %s575_s1, 512 }
   0x4   :  { %s29_s19 = sshll.u32 %s461_s18, 4  ;;  %p322_p0 = scmp.ne.s32.totalorder %s575_s1, %s321_s22  ;;  %s30_s19 = int_to_ptr.vmem [resolvable:$true] %s29_s19 }
   0x5   :  { %p325_p1 = scmp.lt.u32.totalorder %s321_s22, %s575_s1 }
   0x7   :  { %p327_p2 = pnand %p325_p1, %p322_p0 }
   0x9   :  { %330 = shalt.err (!%p327_p2)
}
   0xa   :  { %s331_s27 = scalar_lea.vmem %s30_s19, 512  ;;  %p336_p4 = scmp.lt.s32.totalorder %s30_s19, %s30_s19 }
   0xb   :  { %p332_p3 = scmp.ne.s32.totalorder %s30_s19, %s331_s27  ;;  %p337_p5 = scmp.lt.s32.totalorder %s331_s27, %s331_s27 }
   0xd   :  { %p338_p6 = por %p337_p5, %p336_p4 }
   0xf   :  { %p339_p7 = pnand %p338_p6, %p332_p3 }
  0x11   :  { %342 = shalt.err (!%p339_p7)
}
  0x12   :  { %s462_s28 = smov 128   ;;  %s463_s29 = smov 8  }
  0x13   :  { %35 = dma.hbm_to_vmem [thread:$0]  %s575_s1, 512, %s30_s19, [#allocation6], %s462_s28, %s462_s28, %s463_s29  }
  0x14   :  { %s464_s7 = smov [#allocation8]   ;;  %s465_s9 = smov [#allocation2]  }
  0x15   :  { %s51_s8 = sshll.u32 %s464_s7, 4  ;;  %s20_s10 = sshll.u32 %s465_s9, 4  ;;  %s52_s8 = int_to_ptr.vmem [resolvable:$true] %s51_s8  ;;  %s21_s10 = int_to_ptr.vmem [resolvable:$true] %s20_s10 }
  0x16   :  { %s343_s13 = scalar_lea.hbm %s577_s3, 256 }
  0x17   :  { %p344_p8 = scmp.ne.s32.totalorder %s577_s3, %s343_s13  ;;  %p347_p9 = scmp.lt.u32.totalorder %s343_s13, %s577_s3 }
  0x19   :  { %p349_p10 = pnand %p347_p9, %p344_p8 }
  0x1b   :  { %352 = shalt.err (!%p349_p10)
}
  0x1c   :  { %s353_s1 = scalar_lea.vmem %s52_s8, 256  ;;  %p358_p12 = scmp.lt.s32.totalorder %s52_s8, %s52_s8 }
  0x1d   :  { %p354_p11 = scmp.ne.s32.totalorder %s52_s8, %s353_s1  ;;  %p359_p13 = scmp.lt.s32.totalorder %s353_s1, %s353_s1 }
  0x1f   :  { %p360_p0 = por %p359_p13, %p358_p12 }
  0x21   :  { %p361_p1 = pnand %p360_p0, %p354_p11 }
  0x23   :  { %364 = shalt.err (!%p361_p1)
}
  0x24   :  { %57 = dma.hbm_to_vmem [thread:$0]  %s577_s3, 256, %s52_s8, [#allocation9], %s462_s28, %s462_s28, %s463_s29  }
  0x25   :  { %s365_s22 = scalar_lea.hbm %s574_s0, 128 }
  0x26   :  { %p366_p2 = scmp.ne.s32.totalorder %s574_s0, %s365_s22  ;;  %p369_p3 = scmp.lt.u32.totalorder %s365_s22, %s574_s0 }
  0x28   :  { %p371_p4 = pnand %p369_p3, %p366_p2 }
  0x2a   :  { %374 = shalt.err (!%p371_p4)
}
  0x2b   :  { %s375_s27 = scalar_lea.vmem %s21_s10, 128  ;;  %p380_p6 = scmp.lt.s32.totalorder %s21_s10, %s21_s10 }
  0x2c   :  { %p376_p5 = scmp.ne.s32.totalorder %s21_s10, %s375_s27  ;;  %p381_p7 = scmp.lt.s32.totalorder %s375_s27, %s375_s27 }
  0x2e   :  { %p382_p8 = por %p381_p7, %p380_p6 }
  0x30   :  { %p383_p9 = pnand %p382_p8, %p376_p5 }
  0x32   :  { %386 = shalt.err (!%p383_p9)
}
  0x33   :  { %23 = dma.hbm_to_vmem [thread:$0]  %s574_s0, 128, %s21_s10, [#allocation3]  }
  0x34   :  { %s466_s29 = smov [#allocation7]   ;;  %s467_s6 = smov [#allocation10]  }
  0x35   :  { %s42_s30 = sshll.u32 %s466_s29, 4  ;;  %s64_s7 = sshll.u32 %s467_s6, 4  ;;  %s43_s30 = int_to_ptr.vmem [resolvable:$true] %s42_s30  ;;  %s65_s7 = int_to_ptr.vmem [resolvable:$true] %s64_s7 }
  0x36   :  { %s387_s11 = scalar_lea.hbm %s576_s2, 16 }
  0x37   :  { %p388_p10 = scmp.ne.s32.totalorder %s576_s2, %s387_s11  ;;  %p391_p11 = scmp.lt.u32.totalorder %s387_s11, %s576_s2 }
  0x39   :  { %p393_p12 = pnand %p391_p11, %p388_p10 }
  0x3b   :  { %396 = shalt.err (!%p393_p12)
}
  0x3c   :  { %s397_s0 = scalar_lea.vmem %s43_s30, 16  ;;  %s401_s10 = scalar_lea.vmem %s43_s30, 32 }
  0x3d   :  { %p398_p13 = scmp.ne.s32.totalorder %s43_s30, %s397_s0  ;;  %p402_p0 = scmp.lt.s32.totalorder %s43_s30, %s43_s30 }
  0x3e   :  { %p403_p1 = scmp.lt.s32.totalorder %s401_s10, %s397_s0 }
  0x40   :  { %p404_p2 = por %p403_p1, %p402_p0 }
  0x42   :  { %p405_p3 = pnand %p404_p2, %p398_p13 }
  0x44   :  { %408 = shalt.err (!%p405_p3)
}
  0x45   :  { %45 = dma.hbm_to_vmem [thread:$0]  %s576_s2, 16, %s43_s30, [#allocation6]  }
  0x46   :  { %s409_s19 = scalar_lea.hbm %s578_s4, 16 }
  0x47   :  { %p410_p4 = scmp.ne.s32.totalorder %s578_s4, %s409_s19  ;;  %p413_p5 = scmp.lt.u32.totalorder %s409_s19, %s578_s4 }
  0x49   :  { %p415_p6 = pnand %p413_p5, %p410_p4 }
  0x4b   :  { %418 = shalt.err (!%p415_p6)
}
  0x4c   :  { %s419_s24 = scalar_lea.vmem %s65_s7, 16  ;;  %s423_s25 = scalar_lea.vmem %s65_s7, 32 }
  0x4d   :  { %p420_p7 = scmp.ne.s32.totalorder %s65_s7, %s419_s24  ;;  %p424_p8 = scmp.lt.s32.totalorder %s65_s7, %s65_s7 }
  0x4e   :  { %p425_p9 = scmp.lt.s32.totalorder %s423_s25, %s419_s24 }
  0x50   :  { %p426_p10 = por %p425_p9, %p424_p8 }
  0x52   :  { %p427_p11 = pnand %p426_p10, %p420_p7 }
  0x54   :  { %430 = shalt.err (!%p427_p11)
}
  0x55   :  { %67 = dma.hbm_to_vmem [thread:$0]  %s578_s4, 16, %s65_s7, [#allocation9]  }
  0x56   :  { %453 = dma.done.wait [#allocation3], 128  }
  0x57   :  { %454 = vsyncadd [#allocation3], 4294967168 }
  0x58   :  { %455 = dma.done.wait [#allocation6], 528  }
  0x59   :  { %456 = vsyncadd [#allocation6], 4294966768 }
  0x5a   :  { %457 = dma.done.wait [#allocation9], 272  }
  0x5b   :  { %458 = vsyncadd [#allocation9], 4294967024  ;;  %v468_v0 = vmov 0.0|0.0   ;;  %vm469_vm0 = vmmov 0   ;;  %v470_v1 = vmov 0.0   ;;  %v84_v2 = vld [vmem:[#allocation5] sm:$0xff] }
  0x5c   :  { %301 = vmatprep.subr.bf16.mxu0 %v468_v0  ;;  %291 = vmatprep.mubr.msk.f32.mxu0 %vm469_vm0, %v470_v1  ;;  %v85_v3 = vld [vmem:[#allocation5 + $0x8] sm:$0xff]  ;;  %v86_v4 = vld [vmem:[#allocation5 + $0x10] sm:$0xff]  ;;  %v87_v6 = vld [vmem:[#allocation5 + $0x18] sm:$0xff]  ;;  %vm95_vm1 = vcmask 261120   ;;  %vm179_vm2 = vcmask 130048   ;;  %s471_s4 = smov [#allocation11]  }
  0x5d   :  { %307 = vmatprep.subr.bf16.mxu1 %v468_v0  ;;  %298 = vmatprep.mubr.msk.f32.mxu1 %vm469_vm0, %v470_v1  ;;  %v302_v5 = vpack.c.bf16 %v85_v3, %v84_v2  ;;  %v305_v7 = vpack.c.bf16 %v87_v6, %v86_v4  ;;  %v83_v8 = vld [vmem:[#allocation2] sm:$0xff]  ;;  %v170_v9 = vld [vmem:[#allocation8] sm:$0xff]  ;;  %v171_v10 = vld [vmem:[#allocation8 + $0x8] sm:$0xff]  ;;  %s260_s27 = sshll.u32 %s471_s4, 4  ;;  %s261_s27 = int_to_ptr.vmem [resolvable:$true] %s260_s27 }
  0x5e   :  { %v308_v11 = vpack.c.bf16 %v171_v10, %v170_v9  ;;  %v271_v12 = vld [vmem:[#allocation7] ss:$0 sm:$0xff]  ;;  %v273_v17 = vld [vmem:[#allocation10] ss:$0 sm:$0xff]  ;;  %s431_s3 = scalar_lea.vmem %s261_s27, 128  ;;  %p436_p13 = scmp.lt.s32.totalorder %s261_s27, %s261_s27 }
  0x5f   :  { %303 = vmatpush3.bf16.msra.mxu0 %v302_v5  ;;  %p432_p12 = scmp.ne.s32.totalorder %s261_s27, %s431_s3  ;;  %p437_p0 = scmp.lt.s32.totalorder %s431_s3, %s431_s3 }
  0x60   :  { %304 = vmatprep.subr.bf16.mxu0 %v468_v0  ;;  %309 = vmatpush3.bf16.msra.mxu1 %v308_v11 }
  0x61   :  { %p438_p1 = por %p437_p0, %p436_p13 }
  0x63   :  { %306 = vmatpush3.bf16.msra.mxu0 %v305_v7  ;;  %p439_p2 = pnand %p438_p1, %p432_p12 }
  0x66   :  { %292 = vmatmul.mubr.msk.f32.vlgmr.msra.gmra.mrb[0].mxu0 %vm95_vm1, %v83_v8 }
 0x139   :  { %v165_v13 = vpop.f32.mrb[0].mxu0 }
 0x13a   :  { %v166_v14 = vadd.f32 %v271_v12, %v165_v13  ;;  %v293_v15 = vpop.f32.mrb[1].mxu0 }
 0x13c   :  { %v169_v16 = vmax.f32 %v166_v14, 0.0 }
 0x13e   :  { %299 = vmatmul.mubr.msk.f32.vlgmr.msra.gmra.mrb[0].mxu1 %vm179_vm2, %v169_v16 }
 0x211   :  { %v249_v18 = vpop.f32.mrb[0].mxu1 }
 0x212   :  { %v250_v19 = vadd.f32 %v273_v17, %v249_v18  ;;  %v300_v20 = vpop.f32.mrb[1].mxu1 }
 0x214   :  { %253 = vst [vmem:[#allocation11] sm:$0xff] %v250_v19 }
 0x215   :  { %442 = shalt.err (!%p439_p2)
}
 0x216   :  { %s443_s30 = scalar_lea.hbm %s579_s5, 128 }
 0x217   :  { %p444_p3 = scmp.ne.s32.totalorder %s579_s5, %s443_s30  ;;  %p447_p4 = scmp.lt.u32.totalorder %s443_s30, %s579_s5 }
 0x219   :  { %p449_p5 = pnand %p447_p4, %p444_p3 }
 0x21b   :  { %452 = shalt.err (!%p449_p5)
}
 0x21c   :  { %263 = dma.vmem_to_hbm [thread:$0]  %s261_s27, 128, %s579_s5, [#allocation4]  }
 0x21d   :  { %459 = dma.done.wait [#allocation4], 128  }
 0x21e   :  { %460 = vsyncadd [#allocation4], 4294967168 }
 0x21f   :  { %267 = vsyncpa [#allocation3], 1 }
 0x220   :  { %268 = vsyncpa [#allocation6], 1 }
 0x221   :  { %269 = vsyncpa [#allocation9], 1 }
 0x222   :  { %270 = vsyncpa [#allocation4], 1 }

</bundles_post_ra>
